<compile_context>
chip_gen: v6e
topology: v6e:2x2x1
jax: 0.10.0
libtpu: 0.0.40
codegen_flags: <defaults>
</compile_context>

<pallas_src>
import functools

import jax
import jax.numpy as jnp
from jax import lax
from jax.experimental import pallas as pl
from jax.experimental.pallas import tpu as pltpu


def _mha_kernel(q_ref, k_ref, v_ref,
                wq_ref, wk_ref, wv_ref, wo_ref,
                bq_ref, bk_ref, bv_ref, bo_ref,
                o_ref, kp_ref, vp_ref, *, num_heads, head_dim):
    """One (batch, q-tile) block per grid step.

    q_ref: (1, tq, E)   k_ref/v_ref: (1, Lk, E)
    wq/wk/wv/wo: (E, E) bf16 (pre-transposed: x @ W; 1/sqrt(Dh) folded into wq)
    biases: (1, E) f32 (1/sqrt(Dh) folded into bq)
    o_ref: (1, tq, E)
    kp_ref/vp_ref: (Lk, E) bf16 VMEM scratch -- projected K/V, computed once per
    batch (scratch persists across grid steps; the K/V BlockSpec index depends
    only on the batch axis so the raw K/V blocks are also resident).
    """
    # --- K/V in-projection: only on the first q-tile of each batch. ---------
    @pl.when(pl.program_id(1) == 0)
    def _():
        k = k_ref[0].astype(jnp.bfloat16)   # (Lk, E)
        v = v_ref[0].astype(jnp.bfloat16)   # (Lk, E)
        kp = jnp.dot(k, wk_ref[...], preferred_element_type=jnp.float32) + bk_ref[...]
        vp = jnp.dot(v, wv_ref[...], preferred_element_type=jnp.float32) + bv_ref[...]
        kp_ref[...] = kp.astype(jnp.bfloat16)
        vp_ref[...] = vp.astype(jnp.bfloat16)

    # --- Q in-projection (scale already folded into wq / bq). ---------------
    q = q_ref[0].astype(jnp.bfloat16)        # (tq, E)
    qp = (jnp.dot(q, wq_ref[...], preferred_element_type=jnp.float32)
          + bq_ref[...]).astype(jnp.bfloat16)               # (tq, E) bf16, once

    kp = kp_ref[...]                          # (Lk, E) bf16
    vp = vp_ref[...]                          # (Lk, E) bf16

    # --- Per-head attention; head outputs kept in registers (lane-dense). ---
    heads = []
    for h in range(num_heads):
        lo = h * head_dim
        hi = lo + head_dim
        qh = qp[:, lo:hi]                     # (tq, Dh) bf16
        kh = kp[:, lo:hi]                     # (Lk, Dh) bf16
        vh = vp[:, lo:hi]                     # (Lk, Dh) bf16

        # Scores: contract the head dims directly (no kh.T materialized).
        s = lax.dot_general(qh, kh, (((1,), (1,)), ((), ())),
                            preferred_element_type=jnp.float32)   # (tq, Lk) f32

        # Softmax in f32; reciprocal routed to the EUP.
        s = s - jnp.max(s, axis=-1, keepdims=True)
        p = jnp.exp(s)
        p = p * pl.reciprocal(jnp.sum(p, axis=-1, keepdims=True), approx=True)

        heads.append(jnp.dot(p.astype(jnp.bfloat16), vh,
                             preferred_element_type=jnp.float32))  # (tq, Dh) f32

    ctx = jnp.concatenate(heads, axis=-1).astype(jnp.bfloat16)      # (tq, E)

    # --- Single fused output projection over all heads. ---------------------
    out = jnp.dot(ctx, wo_ref[...], preferred_element_type=jnp.float32) + bo_ref[...]
    o_ref[0] = out.astype(o_ref.dtype)


def _pick_tq(Lq):
    """q-sequence tile.  512 on v6e (128 MiB VMEM) when it divides; 256/128
    elsewhere; whole (small) sequence as the fallback."""
    try:
        kind = jax.devices()[0].device_kind.lower()
    except Exception:  # pragma: no cover - device query is best-effort only
        kind = ""
    candidates = (512, 256, 128) if "v6" in kind else (256, 128)
    for t in candidates:
        if Lq % t == 0:
            return t
    return Lq


def cross_attention(q, k, v, params, num_heads):
    """Pallas implementation of CrossAttention.forward(q, k, v)."""
    B, Lq, E = q.shape
    _, Lk, _ = k.shape
    head_dim = E // num_heads
    assert head_dim * num_heads == E

    tq = _pick_tq(Lq)

    # bf16 weights: halve weight DMA traffic and feed the MXU at its bf16 peak.
    # Fold the 1/sqrt(head_dim) scale into wq and bq (PyTorch scales q after the
    # in-projection, bias included, so x @ (Wq*s) + (bq*s) is exact).
    scale = 1.0 / (head_dim ** 0.5)
    wq = (params["wq"] * scale).astype(jnp.bfloat16)
    wk = params["wk"].astype(jnp.bfloat16)
    wv = params["wv"].astype(jnp.bfloat16)
    wo = params["wo"].astype(jnp.bfloat16)
    bq = params["bq"] * scale
    bk, bv, bo = params["bk"], params["bv"], params["bo"]

    kernel = functools.partial(_mha_kernel, num_heads=num_heads, head_dim=head_dim)

    q_spec = pl.BlockSpec((1, tq, E), lambda b, i: (b, i, 0))
    kv_spec = pl.BlockSpec((1, Lk, E), lambda b, i: (b, 0, 0))   # index only on b
    mat_spec = pl.BlockSpec((E, E), lambda b, i: (0, 0))         # constant -> resident
    bias_spec = pl.BlockSpec((1, E), lambda b, i: (0, 0))

    # Cost estimate matching the executed schedule: q-proj + out-proj per row,
    # K/V proj once per batch, score + PV matmuls per head.
    flops = 2 * B * (2 * Lq * E * E + 2 * Lk * E * E + 2 * Lq * Lk * E)
    io_bytes = q.dtype.itemsize
    bytes_accessed = (io_bytes * (2 * B * Lq * E + 2 * B * Lk * E)  # q, out, k, v
                      + 2 * 4 * E * E                               # 4 bf16 weights
                      + 4 * 4 * E)                                  # 4 f32 biases
    cost = pl.CostEstimate(flops=flops,
                           transcendentals=B * num_heads * Lq * Lk,
                           bytes_accessed=bytes_accessed)

    # VMEM budget (bytes): double-buffered q/out/K/V blocks, (conservatively)
    # double-buffered weights, single-buffered biases, kp/vp bf16 scratch, plus
    # 2x headroom for the compiler's f32 temporaries.  Cap at 64 MiB so the same
    # request is legal on v5e/v6e (128 MiB) and v7x (64 MiB).
    kv_itemsize = k.dtype.itemsize
    est = (2 * tq * E * (q.dtype.itemsize + 4)          # q in, out (f32 acc path)
           + 2 * 2 * Lk * E * kv_itemsize               # k, v blocks, double-buffered
           + 2 * 4 * E * E * 2                          # 4 bf16 weights, double-buffered
           + 4 * 4 * E                                  # biases
           + 2 * Lk * E * 2)                            # kp/vp bf16 scratch
    vmem_limit = int(min(max(2 * est, 32 * 2 ** 20), 64 * 2 ** 20))

    return pl.pallas_call(
        kernel,
        out_shape=jax.ShapeDtypeStruct((B, Lq, E), q.dtype),
        grid_spec=pltpu.PrefetchScalarGridSpec(
            num_scalar_prefetch=0,
            grid=(B, Lq // tq),
            in_specs=[
                q_spec, kv_spec, kv_spec,                       # q, k, v
                mat_spec, mat_spec, mat_spec, mat_spec,         # wq, wk, wv, wo
                bias_spec, bias_spec, bias_spec, bias_spec,     # bq, bk, bv, bo
            ],
            out_specs=pl.BlockSpec((1, tq, E), lambda b, i: (b, i, 0)),
            scratch_shapes=[pltpu.VMEM((Lk, E), jnp.bfloat16),   # kp cache
                            pltpu.VMEM((Lk, E), jnp.bfloat16)],  # vp cache
        ),
        # Batch axis stays "parallel" (megacore / v7x 2-TC split); the q-tile
        # axis must be "arbitrary" because the KV-projection cache in scratch is
        # filled on its first iteration and reused on the rest.
        compiler_params=pltpu.CompilerParams(
            dimension_semantics=("parallel", "arbitrary"),
            vmem_limit_bytes=vmem_limit),
        cost_estimate=cost,
    )(q, k, v, wq, wk, wv, wo, bq, bk, bv, bo)


def cross_attention_ref(q, k, v, params, num_heads):
    """Pure-JAX f32 reference (mirrors torch.nn.MultiheadAttention forward)."""
    B, Lq, E = q.shape
    Dh = E // num_heads
    qp = q @ params["wq"] + params["bq"]
    kp = k @ params["wk"] + params["bk"]
    vp = v @ params["wv"] + params["bv"]
    qh = qp.reshape(B, Lq, num_heads, Dh).transpose(0, 2, 1, 3)
    kh = kp.reshape(B, -1, num_heads, Dh).transpose(0, 2, 1, 3)
    vh = vp.reshape(B, -1, num_heads, Dh).transpose(0, 2, 1, 3)
    s = jnp.einsum("bhqd,bhkd->bhqk", qh, kh) / jnp.sqrt(jnp.float32(Dh))
    p = jax.nn.softmax(s, axis=-1)
    o = jnp.einsum("bhqk,bhkd->bhqd", p, vh)
    o = o.transpose(0, 2, 1, 3).reshape(B, Lq, E)
    return o @ params["wo"] + params["bo"]


def init_params(key, embed_dim):
    """Deterministic synthetic weights matching nn.MultiheadAttention shapes:
    in_proj_weight (3E, E), in_proj_bias (3E,), out_proj (E, E) + (E,).
    Stored pre-transposed so the kernel computes x @ W + b."""
    E = embed_dim
    k1, k2, k3 = jax.random.split(key, 3)
    in_proj_w = jax.random.normal(k1, (3 * E, E), jnp.float32) * (1.0 / jnp.sqrt(E))
    in_proj_b = jax.random.normal(k2, (3 * E,), jnp.float32) * 0.02
    out_w = jax.random.normal(k3, (E, E), jnp.float32) * (1.0 / jnp.sqrt(E))
    out_b = jnp.zeros((E,), jnp.float32)
    return {
        "wq": in_proj_w[0 * E:1 * E].T,
        "wk": in_proj_w[1 * E:2 * E].T,
        "wv": in_proj_w[2 * E:3 * E].T,
        "wo": out_w.T,
        "bq": in_proj_b[0 * E:1 * E].reshape(1, E),
        "bk": in_proj_b[1 * E:2 * E].reshape(1, E),
        "bv": in_proj_b[2 * E:3 * E].reshape(1, E),
        "bo": out_b.reshape(1, E),
    }


if __name__ == "__main__":
    B, Lq, Lk, E, H = 2, 8, 16, 32, 4

    key = jax.random.PRNGKey(0)
    kq, kk, kv, kp = jax.random.split(key, 4)
    q = jax.random.normal(kq, (B, Lq, E), jnp.float32)
    k = jax.random.normal(kk, (B, Lk, E), jnp.float32)
    v = jax.random.normal(kv, (B, Lk, E), jnp.float32)
    params = init_params(kp, E)

    out = jax.block_until_ready(cross_attention(q, k, v, params, num_heads=H))

    ref = cross_attention_ref(q, k, v, params, num_heads=H)
    assert out.shape == (B, Lq, E)
    # bf16 matmul operands + approx reciprocal -> looser tolerance than pure f32.
    err = float(jnp.max(jnp.abs(out - ref)))
    assert jnp.allclose(out, ref, atol=3e-2, rtol=3e-2), f"mismatch vs reference, max abs diff {err}"

    print("KERNEL_OK")
</pallas_src>

<mosaic_0001>
module attributes {stable_mosaic.version = 11 : i64} {
  func.func @_mha_kernel(%arg0: i32, %arg1: i32, %arg2: memref<1x8x32xf32, #tpu.memory_space<vmem>>, %arg3: memref<1x16x32xf32, #tpu.memory_space<vmem>>, %arg4: memref<1x16x32xf32, #tpu.memory_space<vmem>>, %arg5: memref<32x32xbf16, #tpu.memory_space<vmem>>, %arg6: memref<32x32xbf16, #tpu.memory_space<vmem>>, %arg7: memref<32x32xbf16, #tpu.memory_space<vmem>>, %arg8: memref<32x32xbf16, #tpu.memory_space<vmem>>, %arg9: memref<1x32xf32, #tpu.memory_space<vmem>>, %arg10: memref<1x32xf32, #tpu.memory_space<vmem>>, %arg11: memref<1x32xf32, #tpu.memory_space<vmem>>, %arg12: memref<1x32xf32, #tpu.memory_space<vmem>>, %arg13: memref<1x8x32xf32, #tpu.memory_space<vmem>>, %arg14: memref<16x32xbf16, #tpu.memory_space<vmem>>, %arg15: memref<16x32xbf16, #tpu.memory_space<vmem>>) attributes {dimension_semantics = [#tpu.dimension_semantics<parallel>, #tpu.dimension_semantics<arbitrary>], iteration_bounds = array<i64: 2, 1>, scalar_prefetch = 0 : i64, scratch_operands = 2 : i64, tpu.core_type = #tpu.core_type<tc>, window_params = [{transform_indices = @transform_0, window_bounds = array<i64: 1, 8, 32>}, {transform_indices = @transform_1, window_bounds = array<i64: 1, 16, 32>}, {transform_indices = @transform_2, window_bounds = array<i64: 1, 16, 32>}, {pipeline_mode = #tpu.pipeline_mode<synchronous>, transform_indices = @transform_3, window_bounds = array<i64: 32, 32>}, {pipeline_mode = #tpu.pipeline_mode<synchronous>, transform_indices = @transform_4, window_bounds = array<i64: 32, 32>}, {pipeline_mode = #tpu.pipeline_mode<synchronous>, transform_indices = @transform_5, window_bounds = array<i64: 32, 32>}, {pipeline_mode = #tpu.pipeline_mode<synchronous>, transform_indices = @transform_6, window_bounds = array<i64: 32, 32>}, {pipeline_mode = #tpu.pipeline_mode<synchronous>, transform_indices = @transform_7, window_bounds = array<i64: 1, 32>}, {pipeline_mode = #tpu.pipeline_mode<synchronous>, transform_indices = @transform_8, window_bounds = array<i64: 1, 32>}, {pipeline_mode = #tpu.pipeline_mode<synchronous>, transform_indices = @transform_9, window_bounds = array<i64: 1, 32>}, {pipeline_mode = #tpu.pipeline_mode<synchronous>, transform_indices = @transform_10, window_bounds = array<i64: 1, 32>}, {transform_indices = @transform_11, window_bounds = array<i64: 1, 8, 32>}]} {
    %c0_i32 = arith.constant 0 : i32
    %0 = arith.cmpi eq, %arg1, %c0_i32 : i32
    %1 = arith.extui %0 : i1 to i32
    %c0_i32_0 = arith.constant 0 : i32
    %2 = arith.cmpi ne, %1, %c0_i32_0 : i32
    scf.if %2 {
      %c0_35 = arith.constant 0 : index
      %c0_36 = arith.constant 0 : index
      %c0_37 = arith.constant 0 : index
      %88 = vector.load %arg3[%c0_35, %c0_36, %c0_37] : memref<1x16x32xf32, #tpu.memory_space<vmem>>, vector<1x16x32xf32>
      %89 = vector.shape_cast %88 : vector<1x16x32xf32> to vector<16x32xf32>
      %90 = arith.truncf %89 : vector<16x32xf32> to vector<16x32xbf16>
      %c0_38 = arith.constant 0 : index
      %c0_39 = arith.constant 0 : index
      %c0_40 = arith.constant 0 : index
      %91 = vector.load %arg4[%c0_38, %c0_39, %c0_40] : memref<1x16x32xf32, #tpu.memory_space<vmem>>, vector<1x16x32xf32>
      %92 = vector.shape_cast %91 : vector<1x16x32xf32> to vector<16x32xf32>
      %93 = arith.truncf %92 : vector<16x32xf32> to vector<16x32xbf16>
      %c0_41 = arith.constant 0 : index
      %c0_42 = arith.constant 0 : index
      %94 = vector.load %arg6[%c0_41, %c0_42] : memref<32x32xbf16, #tpu.memory_space<vmem>>, vector<32x32xbf16>
      %cst_43 = arith.constant dense<0.000000e+00> : vector<16x32xf32>
      %95 = tpu.matmul %90, %94, %cst_43 {dimension_numbers = #tpu.dot_dimension_numbers<[1], [0], [0], [1], [0, 0, 1, 1], [], []>} : vector<16x32xbf16>, vector<32x32xbf16>, vector<16x32xf32> -> vector<16x32xf32>
      %c0_44 = arith.constant 0 : index
      %c0_45 = arith.constant 0 : index
      %96 = vector.load %arg10[%c0_44, %c0_45] : memref<1x32xf32, #tpu.memory_space<vmem>>, vector<1x32xf32>
      %97 = vector.broadcast %96 : vector<1x32xf32> to vector<16x32xf32>
      %98 = arith.addf %95, %97 : vector<16x32xf32>
      %c0_46 = arith.constant 0 : index
      %c0_47 = arith.constant 0 : index
      %99 = vector.load %arg7[%c0_46, %c0_47] : memref<32x32xbf16, #tpu.memory_space<vmem>>, vector<32x32xbf16>
      %cst_48 = arith.constant dense<0.000000e+00> : vector<16x32xf32>
      %100 = tpu.matmul %93, %99, %cst_48 {dimension_numbers = #tpu.dot_dimension_numbers<[1], [0], [0], [1], [0, 0, 1, 1], [], []>} : vector<16x32xbf16>, vector<32x32xbf16>, vector<16x32xf32> -> vector<16x32xf32>
      %c0_49 = arith.constant 0 : index
      %c0_50 = arith.constant 0 : index
      %101 = vector.load %arg11[%c0_49, %c0_50] : memref<1x32xf32, #tpu.memory_space<vmem>>, vector<1x32xf32>
      %102 = vector.broadcast %101 : vector<1x32xf32> to vector<16x32xf32>
      %103 = arith.addf %100, %102 : vector<16x32xf32>
      %104 = arith.truncf %98 : vector<16x32xf32> to vector<16x32xbf16>
      %c0_51 = arith.constant 0 : index
      %c0_52 = arith.constant 0 : index
      %105 = vector.load %arg14[%c0_51, %c0_52] : memref<16x32xbf16, #tpu.memory_space<vmem>>, vector<16x32xbf16>
      tpu.vector_store %arg14[%c0_51, %c0_52], %104 {strides = array<i32>} : memref<16x32xbf16, #tpu.memory_space<vmem>>, vector<16x32xbf16>,
      %106 = arith.truncf %103 : vector<16x32xf32> to vector<16x32xbf16>
      %c0_53 = arith.constant 0 : index
      %c0_54 = arith.constant 0 : index
      %107 = vector.load %arg15[%c0_53, %c0_54] : memref<16x32xbf16, #tpu.memory_space<vmem>>, vector<16x32xbf16>
      tpu.vector_store %arg15[%c0_53, %c0_54], %106 {strides = array<i32>} : memref<16x32xbf16, #tpu.memory_space<vmem>>, vector<16x32xbf16>,
    } else {
    }
    %c0 = arith.constant 0 : index
    %c0_1 = arith.constant 0 : index
    %c0_2 = arith.constant 0 : index
    %3 = vector.load %arg2[%c0, %c0_1, %c0_2] : memref<1x8x32xf32, #tpu.memory_space<vmem>>, vector<1x8x32xf32>
    %4 = vector.shape_cast %3 : vector<1x8x32xf32> to vector<8x32xf32>
    %5 = arith.truncf %4 : vector<8x32xf32> to vector<8x32xbf16>
    %c0_3 = arith.constant 0 : index
    %c0_4 = arith.constant 0 : index
    %6 = vector.load %arg5[%c0_3, %c0_4] : memref<32x32xbf16, #tpu.memory_space<vmem>>, vector<32x32xbf16>
    %cst = arith.constant dense<0.000000e+00> : vector<8x32xf32>
    %7 = tpu.matmul %5, %6, %cst {dimension_numbers = #tpu.dot_dimension_numbers<[1], [0], [0], [1], [0, 0, 1, 1], [], []>} : vector<8x32xbf16>, vector<32x32xbf16>, vector<8x32xf32> -> vector<8x32xf32>
    %c0_5 = arith.constant 0 : index
    %c0_6 = arith.constant 0 : index
    %8 = vector.load %arg9[%c0_5, %c0_6] : memref<1x32xf32, #tpu.memory_space<vmem>>, vector<1x32xf32>
    %9 = vector.broadcast %8 : vector<1x32xf32> to vector<8x32xf32>
    %10 = arith.addf %7, %9 : vector<8x32xf32>
    %11 = arith.truncf %10 : vector<8x32xf32> to vector<8x32xbf16>
    %c0_7 = arith.constant 0 : index
    %c0_8 = arith.constant 0 : index
    %12 = vector.load %arg14[%c0_7, %c0_8] : memref<16x32xbf16, #tpu.memory_space<vmem>>, vector<16x32xbf16>
    %c0_9 = arith.constant 0 : index
    %c0_10 = arith.constant 0 : index
    %13 = vector.load %arg15[%c0_9, %c0_10] : memref<16x32xbf16, #tpu.memory_space<vmem>>, vector<16x32xbf16>
    %14 = vector.extract_strided_slice %11 {offsets = [0, 0], sizes = [8, 8], strides = [1, 1]} : vector<8x32xbf16> to vector<8x8xbf16>
    %15 = vector.extract_strided_slice %12 {offsets = [0, 0], sizes = [16, 8], strides = [1, 1]} : vector<16x32xbf16> to vector<16x8xbf16>
    %16 = vector.extract_strided_slice %13 {offsets = [0, 0], sizes = [16, 8], strides = [1, 1]} : vector<16x32xbf16> to vector<16x8xbf16>
    %cst_11 = arith.constant dense<0.000000e+00> : vector<8x16xf32>
    %17 = tpu.matmul %14, %15, %cst_11 {dimension_numbers = #tpu.dot_dimension_numbers<[1], [1], [0], [0], [0, 0, 1, 0], [], []>} : vector<8x8xbf16>, vector<16x8xbf16>, vector<8x16xf32> -> vector<8x16xf32>
    %cst_12 = arith.constant dense<0xFF800000> : vector<8xf32>
    %18 = vector.multi_reduction <maximumf>, %17, %cst_12 [1] : vector<8x16xf32> to vector<8xf32>
    %19 = vector.shape_cast %18 : vector<8xf32> to vector<8x1xf32>
    %20 = vector.broadcast %19 : vector<8x1xf32> to vector<8x16xf32>
    %21 = arith.subf %17, %20 : vector<8x16xf32>
    %22 = math.exp %21 : vector<8x16xf32>
    %cst_13 = arith.constant dense<0.000000e+00> : vector<8xf32>
    %23 = vector.multi_reduction <add>, %22, %cst_13 [1] : vector<8x16xf32> to vector<8xf32>
    %24 = vector.shape_cast %23 : vector<8xf32> to vector<8x1xf32>
    %25 = tpu.reciprocal %24 {approx = true} : vector<8x1xf32> -> vector<8x1xf32>
    %26 = vector.broadcast %25 : vector<8x1xf32> to vector<8x16xf32>
    %27 = arith.mulf %22, %26 : vector<8x16xf32>
    %28 = arith.truncf %27 : vector<8x16xf32> to vector<8x16xbf16>
    %cst_14 = arith.constant dense<0.000000e+00> : vector<8x8xf32>
    %29 = tpu.matmul %28, %16, %cst_14 {dimension_numbers = #tpu.dot_dimension_numbers<[1], [0], [0], [1], [0, 0, 1, 1], [], []>} : vector<8x16xbf16>, vector<16x8xbf16>, vector<8x8xf32> -> vector<8x8xf32>
    %30 = vector.extract_strided_slice %11 {offsets = [0, 8], sizes = [8, 8], strides = [1, 1]} : vector<8x32xbf16> to vector<8x8xbf16>
    %31 = vector.extract_strided_slice %12 {offsets = [0, 8], sizes = [16, 8], strides = [1, 1]} : vector<16x32xbf16> to vector<16x8xbf16>
    %32 = vector.extract_strided_slice %13 {offsets = [0, 8], sizes = [16, 8], strides = [1, 1]} : vector<16x32xbf16> to vector<16x8xbf16>
    %cst_15 = arith.constant dense<0.000000e+00> : vector<8x16xf32>
    %33 = tpu.matmul %30, %31, %cst_15 {dimension_numbers = #tpu.dot_dimension_numbers<[1], [1], [0], [0], [0, 0, 1, 0], [], []>} : vector<8x8xbf16>, vector<16x8xbf16>, vector<8x16xf32> -> vector<8x16xf32>
    %cst_16 = arith.constant dense<0xFF800000> : vector<8xf32>
    %34 = vector.multi_reduction <maximumf>, %33, %cst_16 [1] : vector<8x16xf32> to vector<8xf32>
    %35 = vector.shape_cast %34 : vector<8xf32> to vector<8x1xf32>
    %36 = vector.broadcast %35 : vector<8x1xf32> to vector<8x16xf32>
    %37 = arith.subf %33, %36 : vector<8x16xf32>
    %38 = math.exp %37 : vector<8x16xf32>
    %cst_17 = arith.constant dense<0.000000e+00> : vector<8xf32>
    %39 = vector.multi_reduction <add>, %38, %cst_17 [1] : vector<8x16xf32> to vector<8xf32>
    %40 = vector.shape_cast %39 : vector<8xf32> to vector<8x1xf32>
    %41 = tpu.reciprocal %40 {approx = true} : vector<8x1xf32> -> vector<8x1xf32>
    %42 = vector.broadcast %41 : vector<8x1xf32> to vector<8x16xf32>
    %43 = arith.mulf %38, %42 : vector<8x16xf32>
    %44 = arith.truncf %43 : vector<8x16xf32> to vector<8x16xbf16>
    %cst_18 = arith.constant dense<0.000000e+00> : vector<8x8xf32>
    %45 = tpu.matmul %44, %32, %cst_18 {dimension_numbers = #tpu.dot_dimension_numbers<[1], [0], [0], [1], [0, 0, 1, 1], [], []>} : vector<8x16xbf16>, vector<16x8xbf16>, vector<8x8xf32> -> vector<8x8xf32>
    %46 = vector.extract_strided_slice %11 {offsets = [0, 16], sizes = [8, 8], strides = [1, 1]} : vector<8x32xbf16> to vector<8x8xbf16>
    %47 = vector.extract_strided_slice %12 {offsets = [0, 16], sizes = [16, 8], strides = [1, 1]} : vector<16x32xbf16> to vector<16x8xbf16>
    %48 = vector.extract_strided_slice %13 {offsets = [0, 16], sizes = [16, 8], strides = [1, 1]} : vector<16x32xbf16> to vector<16x8xbf16>
    %cst_19 = arith.constant dense<0.000000e+00> : vector<8x16xf32>
    %49 = tpu.matmul %46, %47, %cst_19 {dimension_numbers = #tpu.dot_dimension_numbers<[1], [1], [0], [0], [0, 0, 1, 0], [], []>} : vector<8x8xbf16>, vector<16x8xbf16>, vector<8x16xf32> -> vector<8x16xf32>
    %cst_20 = arith.constant dense<0xFF800000> : vector<8xf32>
    %50 = vector.multi_reduction <maximumf>, %49, %cst_20 [1] : vector<8x16xf32> to vector<8xf32>
    %51 = vector.shape_cast %50 : vector<8xf32> to vector<8x1xf32>
    %52 = vector.broadcast %51 : vector<8x1xf32> to vector<8x16xf32>
    %53 = arith.subf %49, %52 : vector<8x16xf32>
    %54 = math.exp %53 : vector<8x16xf32>
    %cst_21 = arith.constant dense<0.000000e+00> : vector<8xf32>
    %55 = vector.multi_reduction <add>, %54, %cst_21 [1] : vector<8x16xf32> to vector<8xf32>
    %56 = vector.shape_cast %55 : vector<8xf32> to vector<8x1xf32>
    %57 = tpu.reciprocal %56 {approx = true} : vector<8x1xf32> -> vector<8x1xf32>
    %58 = vector.broadcast %57 : vector<8x1xf32> to vector<8x16xf32>
    %59 = arith.mulf %54, %58 : vector<8x16xf32>
    %60 = arith.truncf %59 : vector<8x16xf32> to vector<8x16xbf16>
    %cst_22 = arith.constant dense<0.000000e+00> : vector<8x8xf32>
    %61 = tpu.matmul %60, %48, %cst_22 {dimension_numbers = #tpu.dot_dimension_numbers<[1], [0], [0], [1], [0, 0, 1, 1], [], []>} : vector<8x16xbf16>, vector<16x8xbf16>, vector<8x8xf32> -> vector<8x8xf32>
    %62 = vector.extract_strided_slice %11 {offsets = [0, 24], sizes = [8, 8], strides = [1, 1]} : vector<8x32xbf16> to vector<8x8xbf16>
    %63 = vector.extract_strided_slice %12 {offsets = [0, 24], sizes = [16, 8], strides = [1, 1]} : vector<16x32xbf16> to vector<16x8xbf16>
    %64 = vector.extract_strided_slice %13 {offsets = [0, 24], sizes = [16, 8], strides = [1, 1]} : vector<16x32xbf16> to vector<16x8xbf16>
    %cst_23 = arith.constant dense<0.000000e+00> : vector<8x16xf32>
    %65 = tpu.matmul %62, %63, %cst_23 {dimension_numbers = #tpu.dot_dimension_numbers<[1], [1], [0], [0], [0, 0, 1, 0], [], []>} : vector<8x8xbf16>, vector<16x8xbf16>, vector<8x16xf32> -> vector<8x16xf32>
    %cst_24 = arith.constant dense<0xFF800000> : vector<8xf32>
    %66 = vector.multi_reduction <maximumf>, %65, %cst_24 [1] : vector<8x16xf32> to vector<8xf32>
    %67 = vector.shape_cast %66 : vector<8xf32> to vector<8x1xf32>
    %68 = vector.broadcast %67 : vector<8x1xf32> to vector<8x16xf32>
    %69 = arith.subf %65, %68 : vector<8x16xf32>
    %70 = math.exp %69 : vector<8x16xf32>
    %cst_25 = arith.constant dense<0.000000e+00> : vector<8xf32>
    %71 = vector.multi_reduction <add>, %70, %cst_25 [1] : vector<8x16xf32> to vector<8xf32>
    %72 = vector.shape_cast %71 : vector<8xf32> to vector<8x1xf32>
    %73 = tpu.reciprocal %72 {approx = true} : vector<8x1xf32> -> vector<8x1xf32>
    %74 = vector.broadcast %73 : vector<8x1xf32> to vector<8x16xf32>
    %75 = arith.mulf %70, %74 : vector<8x16xf32>
    %76 = arith.truncf %75 : vector<8x16xf32> to vector<8x16xbf16>
    %cst_26 = arith.constant dense<0.000000e+00> : vector<8x8xf32>
    %77 = tpu.matmul %76, %64, %cst_26 {dimension_numbers = #tpu.dot_dimension_numbers<[1], [0], [0], [1], [0, 0, 1, 1], [], []>} : vector<8x16xbf16>, vector<16x8xbf16>, vector<8x8xf32> -> vector<8x8xf32>
    %78 = tpu.concatenate %29, %45, %61, %77 in 1 : vector<8x8xf32>, vector<8x8xf32>, vector<8x8xf32>, vector<8x8xf32> -> vector<8x32xf32>
    %79 = arith.truncf %78 : vector<8x32xf32> to vector<8x32xbf16>
    %c0_27 = arith.constant 0 : index
    %c0_28 = arith.constant 0 : index
    %80 = vector.load %arg8[%c0_27, %c0_28] : memref<32x32xbf16, #tpu.memory_space<vmem>>, vector<32x32xbf16>
    %cst_29 = arith.constant dense<0.000000e+00> : vector<8x32xf32>
    %81 = tpu.matmul %79, %80, %cst_29 {dimension_numbers = #tpu.dot_dimension_numbers<[1], [0], [0], [1], [0, 0, 1, 1], [], []>} : vector<8x32xbf16>, vector<32x32xbf16>, vector<8x32xf32> -> vector<8x32xf32>
    %c0_30 = arith.constant 0 : index
    %c0_31 = arith.constant 0 : index
    %82 = vector.load %arg12[%c0_30, %c0_31] : memref<1x32xf32, #tpu.memory_space<vmem>>, vector<1x32xf32>
    %83 = vector.broadcast %82 : vector<1x32xf32> to vector<8x32xf32>
    %84 = arith.addf %81, %83 : vector<8x32xf32>
    %c0_32 = arith.constant 0 : index
    %c0_33 = arith.constant 0 : index
    %c0_34 = arith.constant 0 : index
    %85 = vector.load %arg13[%c0_32, %c0_33, %c0_34] : memref<1x8x32xf32, #tpu.memory_space<vmem>>, vector<1x8x32xf32>
    %86 = vector.shape_cast %85 : vector<1x8x32xf32> to vector<8x32xf32>
    %87 = vector.shape_cast %84 : vector<8x32xf32> to vector<1x8x32xf32>
    tpu.vector_store %arg13[%c0_32, %c0_33, %c0_34], %87 {strides = array<i32>} : memref<1x8x32xf32, #tpu.memory_space<vmem>>, vector<1x8x32xf32>,
    return
  }
  func.func @transform_0(%arg0: i32, %arg1: i32) -> (i32, i32, i32) {
    %c0_i32 = arith.constant 0 : i32
    %c0_i32_0 = arith.constant 0 : i32
    return %arg0, %arg1, %c0_i32 : i32, i32, i32
  }
  func.func @transform_1(%arg0: i32, %arg1: i32) -> (i32, i32, i32) {
    %c0_i32 = arith.constant 0 : i32
    %c0_i32_0 = arith.constant 0 : i32
    %c0_i32_1 = arith.constant 0 : i32
    return %arg0, %c0_i32, %c0_i32_0 : i32, i32, i32
  }
  func.func @transform_2(%arg0: i32, %arg1: i32) -> (i32, i32, i32) {
    %c0_i32 = arith.constant 0 : i32
    %c0_i32_0 = arith.constant 0 : i32
    %c0_i32_1 = arith.constant 0 : i32
    return %arg0, %c0_i32, %c0_i32_0 : i32, i32, i32
  }
  func.func @transform_3(%arg0: i32, %arg1: i32) -> (i32, i32) {
    %c0_i32 = arith.constant 0 : i32
    %c0_i32_0 = arith.constant 0 : i32
    %c0_i32_1 = arith.constant 0 : i32
    return %c0_i32, %c0_i32_0 : i32, i32
  }
  func.func @transform_4(%arg0: i32, %arg1: i32) -> (i32, i32) {
    %c0_i32 = arith.constant 0 : i32
    %c0_i32_0 = arith.constant 0 : i32
    %c0_i32_1 = arith.constant 0 : i32
    return %c0_i32, %c0_i32_0 : i32, i32
  }
  func.func @transform_5(%arg0: i32, %arg1: i32) -> (i32, i32) {
    %c0_i32 = arith.constant 0 : i32
    %c0_i32_0 = arith.constant 0 : i32
    %c0_i32_1 = arith.constant 0 : i32
    return %c0_i32, %c0_i32_0 : i32, i32
  }
  func.func @transform_6(%arg0: i32, %arg1: i32) -> (i32, i32) {
    %c0_i32 = arith.constant 0 : i32
    %c0_i32_0 = arith.constant 0 : i32
    %c0_i32_1 = arith.constant 0 : i32
    return %c0_i32, %c0_i32_0 : i32, i32
  }
  func.func @transform_7(%arg0: i32, %arg1: i32) -> (i32, i32) {
    %c0_i32 = arith.constant 0 : i32
    %c0_i32_0 = arith.constant 0 : i32
    %c0_i32_1 = arith.constant 0 : i32
    return %c0_i32, %c0_i32_0 : i32, i32
  }
  func.func @transform_8(%arg0: i32, %arg1: i32) -> (i32, i32) {
    %c0_i32 = arith.constant 0 : i32
    %c0_i32_0 = arith.constant 0 : i32
    %c0_i32_1 = arith.constant 0 : i32
    return %c0_i32, %c0_i32_0 : i32, i32
  }
  func.func @transform_9(%arg0: i32, %arg1: i32) -> (i32, i32) {
    %c0_i32 = arith.constant 0 : i32
    %c0_i32_0 = arith.constant 0 : i32
    %c0_i32_1 = arith.constant 0 : i32
    return %c0_i32, %c0_i32_0 : i32, i32
  }
  func.func @transform_10(%arg0: i32, %arg1: i32) -> (i32, i32) {
    %c0_i32 = arith.constant 0 : i32
    %c0_i32_0 = arith.constant 0 : i32
    %c0_i32_1 = arith.constant 0 : i32
    return %c0_i32, %c0_i32_0 : i32, i32
  }
  func.func @transform_11(%arg0: i32, %arg1: i32) -> (i32, i32, i32) {
    %c0_i32 = arith.constant 0 : i32
    %c0_i32_0 = arith.constant 0 : i32
    return %arg0, %arg1, %c0_i32 : i32, i32, i32
  }
}

</mosaic_0001>

<bundles_post_ra>
// kernel: tpu_custom_call.1
= control target key start
LH: loop header
LB: loop body
LE: loop exit
PB: predicated region body
PF: predicated region fallthrough
CT: control target
= control target key end

     0   :  { %s2561_s0 = inlined_call_operand.hbm [shape: f32[2,8,32], index: 0, kind: input, shape index: {}]   ;;  %s2562_s1 = inlined_call_operand.hbm [shape: f32[2,16,32], index: 1, kind: input, shape index: {}]   ;;  %s2563_s2 = inlined_call_operand.hbm [shape: f32[2,16,32], index: 2, kind: input, shape index: {}]   ;;  %s2564_s3 = inlined_call_operand.hbm [shape: bf16[32,32], index: 3, kind: input, shape index: {}]   ;;  %s2565_s4 = inlined_call_operand.hbm [shape: bf16[32,32], index: 4, kind: input, shape index: {}]   ;;  %s2566_s5 = inlined_call_operand.hbm [shape: bf16[32,32], index: 5, kind: input, shape index: {}]   ;;  %s2567_s6 = inlined_call_operand.hbm [shape: bf16[32,32], index: 6, kind: input, shape index: {}]   ;;  %s2568_s7 = inlined_call_operand.vmem [shape: f32[1,32], index: 7, kind: input, shape index: {}]   ;;  %s2569_s8 = inlined_call_operand.vmem [shape: f32[1,32], index: 8, kind: input, shape index: {}]   ;;  %s2570_s9 = inlined_call_operand.vmem [shape: f32[1,32], index: 9, kind: input, shape index: {}]   ;;  %s2571_s10 = inlined_call_operand.vmem [shape: f32[1,32], index: 10, kind: input, shape index: {}]   ;;  %s2572_s11 = inlined_call_operand.hbm [shape: f32[2,8,32], index: 11, kind: output, shape index: {}]  }
   0x1   :  { %2590 = sst [smem:[#allocation30_spill]] %s2562_s1 }
   0x2   :  { %2591 = sst [smem:[#allocation31_spill]] %s2564_s3 }
   0x3   :  { %2592 = sst [smem:[#allocation32_spill]] %s2566_s5 }
   0x4   :  { %2593 = sst [smem:[#allocation33_spill]] %s2570_s9 }
   0x5   :  { %2594 = sst [smem:[#allocation34_spill]] %s2571_s10 }
   0x6   :  { %2595 = sst [smem:[#allocation35_spill]] %s2572_s11 }
   0x7   :  { %16 = vsyncpa [#allocation5], 0 }
   0x8   :  { %18 = vsyncpa [#allocation5 + $0x1], 0 }
   0x9   :  { %19 = vsyncpa [#allocation8], 0 }
   0xa   :  { %21 = vsyncpa [#allocation8 + $0x1], 0 }
   0xb   :  { %22 = vsyncpa [#allocation11], 0 }
   0xc   :  { %23 = vsyncpa [#allocation14], 0 }
   0xd   :  { %24 = vsyncpa [#allocation6], 0 }
   0xe   :  { %26 = vsyncpa [#allocation6 + $0x1], 0  ;;  %s2180_s17 = smov 0   ;;  %s2182_s18 = smov 0  }
   0xf   :  { %s2184_s19 = smov 0   ;;  %s2186_s20 = smov 0  }
  0x10   :  { %s2188_s21 = smov 0   ;;  %s2190_s22 = smov 0  }
  0x11 LB: > { %2596 = sst [smem:[#allocation22_spill]] %s2078_s17  ;;  %s2211_s23 = sadd.s32 4294967295, %s2098_s22   ;;  %s2098_s22 = sphi %s2190_s22, %s32_s22   ;;  %s2094_s21 = sphi %s2188_s21, %s2640_s21   ;;  %s2090_s20 = sphi %s2186_s20, %s2639_s20   ;;  %s2086_s19 = sphi %s2184_s19, %s2635_s19   ;;  %s2082_s18 = sphi %s2182_s18, %s2638_s18   ;;  %s2078_s17 = sphi %s2180_s17, %s2637_s17  }
  0x12   : > { %2597 = sst [smem:[#allocation23_spill]] %s2086_s19  ;;  %s1495_s24 = sadd.s32 4294967294, %s2098_s22  }
  0x13   : > { %2598 = sst [smem:[#allocation24_spill]] %s2090_s20  ;;  %p66_p0 = scmp.ne.s32.totalorder %s2082_s18, %s2078_s17 }
  0x14   : > { %2599 = sst [smem:[#allocation25_spill]] %s2098_s22  ;;  %p2574_p1 = scmp.eq.s32.totalorder %s2211_s23, 0 }
  0x15   : > { %p312_p2 = scmp.eq.s32.totalorder %s2211_s23, 1  ;;  %p318_p3 = scmp.eq.s32.totalorder %s1495_s24, 1 }
  0x16   : > { %p2220_p4 = por %p2574_p1, %p66_p0  ;;  %p1496_p5 = scmp.ge.s32.totalorder %s2098_s22, 1 }
  0x17   : > { %p2225_p6 = por %p318_p3, %p66_p0  ;;  %p325_p7 = scmp.lt.s32.totalorder %s2098_s22, 3 }
  0x18   : > { %s2100_s28 = smov [#allocation10]   ;;  %s2101_s12 = smov [#allocation13]  }
  0x19   : > { %s2601_s26 = scalar_select %p2225_p6, 1, 0 }
  0x1a   : > { %p2230_p8 = pnand %p1496_p5, %p325_p7  ;;  %s337_s29 = sshll.u32 %s2100_s28, 4  ;;  %s338_s29 = int_to_ptr.vmem [resolvable:$true] %s337_s29 }
  0x1b   : > { %2602 = sst [smem:[#allocation26_spill]] %s2601_s26  ;;  %s363_s13 = sshll.u32 %s2101_s12, 4  ;;  %s364_s13 = int_to_ptr.vmem [resolvable:$true] %s363_s13 }
  0x1c   : > { %p1691_p9 = pneg %p2230_p8  ;;  %s1829_s14 = scalar_lea.vmem %s338_s29, 256 }
  0x1d   : > { %p1830_p13 = scmp.ne.s32.totalorder %s338_s29, %s1829_s14  ;;  %p1837_p5 = scmp.lt.s32.totalorder %s338_s29, %s338_s29 }
  0x1e   : > { %p2239_p11 = pnand %p1691_p9, %p2574_p1  ;;  %p1838_p7 = scmp.lt.s32.totalorder %s1829_s14, %s1829_s14 }
  0x20   : > { %p2585_p12 = pneg %p2239_p11  ;;  %p1839_p10 = por %p1838_p7, %p1837_p5 }
  0x22   : > { %p1832_p0 = pnand %p1830_p13, %p2585_p12 }
  0x24   : > { %p1833_p3 = pneg %p1832_p0 }
  0x26   : > { %p1840_p9 = pnand %p1839_p10, %p1833_p3 }
  0x28   : > { %1843 = shalt.err (!%p1840_p9)
}
  0x29   : > { %s2575_s15 = smov 64   ;;  %s2577_s16 = smov 4  }
  0x2a   : > { %s2605_s3 = sld [smem:[#allocation31_spill]]  ;;  %s1855_s12 = scalar_lea.vmem %s364_s13, 256 }
  0x2b   : > { %p1856_p13 = scmp.ne.s32.totalorder %s364_s13, %s1855_s12  ;;  %p1863_p10 = scmp.lt.s32.totalorder %s364_s13, %s364_s13 }
  0x2c   : > { %p1864_p3 = scmp.lt.s32.totalorder %s1855_s12, %s1855_s12 }
  0x2d   : > { %p1858_p0 = pnand %p1856_p13, %p2585_p12 }
  0x2e   : > { %p1865_p7 = por %p1864_p3, %p1863_p10 }
  0x2f   : > { %p1859_p5 = pneg %p1858_p0 }
  0x30   : > { %1694 = dma.hbm_to_vmem [thread:$0]  (!%p2239_p11), %s2605_s3, 256, %s338_s29, [#allocation11], %s2575_s15, %s2575_s15, %s2577_s16  }
  0x31   : > { %p1866_p9 = pnand %p1865_p7, %p1859_p5 }
  0x33   : > { %1869 = shalt.err (!%p1866_p9)
}
  0x34   : > { %s2606_s5 = sld [smem:[#allocation32_spill]]  ;;  %s44_s29 = sadd.s32 1, %s2094_s21 }
  0x35   : > { %s53_s24 = sadd.s32 1, %s2086_s19  ;;  %p46_p13 = scmp.ge.s32.totalorder %s44_s29, 2 }
  0x36   : > { %p60_p0 = scmp.ne.s32.totalorder %s2086_s19, %s2082_s18  ;;  %p61_p5 = scmp.eq.s32.totalorder %s2098_s22, 0 }
  0x37   : > { %p1722_p10 = scmp.lt.s32.totalorder %s2098_s22, 2  ;;  %s2642_s29 = smov (%p46_p13, %s44_s29), 0 }
  0x38   : > { %2607 = sst [smem:[#allocation27_spill]] %s2642_s29  ;;  %p62_p3 = por %p61_p5, %p60_p0 }
  0x39   : > { %p2277_p7 = por %p312_p2, %p60_p0  ;;  %s48_s28 = ssub.s32 %s2094_s21, %s2642_s29 }
  0x3a   : > { %1700 = dma.hbm_to_vmem [thread:$0]  (!%p2239_p11), %s2606_s5, 256, %s364_s13, [#allocation14], %s2575_s15, %s2575_s15, %s2577_s16  }
  0x3b   : > { %s2608_s26 = scalar_select %p2277_p7, 1, 0 }
  0x3c   : > { %s2284_s12 = sand.u32 1, %s2086_s19   ;;  %p51_p9 = scmp.eq.s32.totalorder %s48_s28, 0 }
  0x3d   : > { %2609 = sst [smem:[#allocation28_spill]] %s2608_s26  ;;  %p2286_p1 = pnand %p1722_p10, %p62_p3 }
  0x3e   : > { %s421_s14 = sand.u32 1, %s2098_s22   ;;  %s1504_s15 = sshll.u32 %s2284_s12, 4 }
  0x3f   : > { %s2293_s16 = scalar_select %p51_p9, %s2086_s19, %s53_s24  }
  0x40   : > { %s1553_s3 = sshll.u32 %s2094_s21, 8  ;;  %s2612_s1 = sld [smem:[#allocation30_spill]] }
  0x41   : > { %2611 = sst [smem:[#allocation29_spill]] %s2293_s16  ;;  %s425_s11 = scalar_lea.vmem [#allocation7], %s1504_s15 }
  0x42   : > { %s432_s10 = sshll.u32 %s425_s11, 4  ;;  %s2301_s28 = scalar_lea.sflag [#allocation8], %s421_s14  ;;  %s433_s10 = int_to_ptr.vmem [resolvable:$true] %s432_s10 }
  0x43   : > { %p2588_p2 = pneg %p2286_p1  ;;  %s1883_s26 = scalar_lea.vmem %s433_s10, 256 }
  0x44   : > { %p1884_p13 = scmp.ne.s32.totalorder %s433_s10, %s1883_s26  ;;  %s2104_s24 = smov [#allocation7]  }
  0x45   : > { %s1888_s16 = sshll.u32 %s2104_s24, 4  ;;  %s1889_s16 = int_to_ptr.vmem [resolvable:$false] %s1888_s16 }
  0x46   : > { %s431_s29 = scalar_lea.hbm %s2612_s1, %s1553_s3  ;;  %p1886_p0 = pnand %p1884_p13, %p2588_p2 }
  0x47   : > { %s1890_s19 = scalar_lea.vmem %s1889_s16, 512  ;;  %p1891_p10 = scmp.lt.s32.totalorder %s433_s10, %s1889_s16 }
  0x48   : > { %p1887_p5 = pneg %p1886_p0  ;;  %p1892_p3 = scmp.lt.s32.totalorder %s1890_s19, %s1883_s26 }
  0x4a   : > { %p1893_p9 = por %p1892_p3, %p1891_p10 }
  0x4c   : > { %p1894_p12 = pnand %p1893_p9, %p1887_p5 }
  0x4e   : > { %1897 = shalt.err (!%p1894_p12)
}
  0x4f   : > { %s2589_s5 = smov 128   ;;  %s2106_s11 = smov 8  }
  0x50   : > { %1710 = dma.hbm_to_vmem [thread:$0]  (!%p2286_p1), %s431_s29, 256, %s433_s10, %s2301_s28, %s2589_s5, %s2589_s5, %s2106_s11  }
  0x51   : > { %s2317_s24 = scalar_lea.hbm %s2563_s2, %s1553_s3  ;;  %s2321_s19 = scalar_lea.vmem [#allocation9], %s1504_s15 }
  0x52   : > { %s453_s16 = sshll.u32 %s2321_s19, 4  ;;  %s2107_s26 = smov [#allocation12]   ;;  %s2353_s16 = int_to_ptr.vmem [resolvable:$true] %s453_s16 }
  0x53   : > { %s350_s1 = sshll.u32 %s2107_s26, 4  ;;  %s2108_s22 = smov [#allocation15]   ;;  %s351_s1 = int_to_ptr.vmem [resolvable:$true] %s350_s1 }
  0x54   : > { %s376_s20 = sshll.u32 %s2108_s22, 4  ;;  %s1909_s9 = scalar_lea.vmem %s351_s1, 256  ;;  %s377_s20 = int_to_ptr.vmem [resolvable:$true] %s376_s20 }
  0x55   : > { %p1910_p12 = scmp.ne.s32.totalorder %s351_s1, %s1909_s9  ;;  %p2613_p13 = pneg %p2239_p11 }
  0x56   : > { %p1917_p10 = scmp.lt.s32.totalorder %s351_s1, %s351_s1  ;;  %p1918_p3 = scmp.lt.s32.totalorder %s1909_s9, %s1909_s9 }
  0x57   : > { %p1912_p0 = pnand %p1910_p12, %p2613_p13 }
  0x58   : > { %p1919_p9 = por %p1918_p3, %p1917_p10 }
  0x59   : > { %p1913_p5 = pneg %p1912_p0 }
  0x5b   : > { %p1920_p2 = pnand %p1919_p9, %p1913_p5 }
  0x5d   : > { %1923 = shalt.err (!%p1920_p2)
}
  0x5e   : > { %s2614_s3 = smov 4   ;;  %s2615_s10 = smov 64  }
  0x5f   : > { %1697 = dma.hbm_to_vmem [thread:$0]  (!%p2239_p11), %s2565_s4, 256, %s351_s1, [#allocation11], %s2615_s10, %s2615_s10, %s2614_s3  }
  0x60   : > { %s1935_s22 = scalar_lea.vmem %s377_s20, 256  ;;  %p2616_p12 = pmov %p2613_p13 }
  0x61   : > { %p1936_p6 = scmp.ne.s32.totalorder %s377_s20, %s1935_s22  ;;  %p1943_p10 = scmp.lt.s32.totalorder %s377_s20, %s377_s20 }
  0x62   : > { %p1944_p5 = scmp.lt.s32.totalorder %s1935_s22, %s1935_s22 }
  0x63   : > { %p1938_p13 = pnand %p1936_p6, %p2616_p12 }
  0x64   : > { %p1945_p2 = por %p1944_p5, %p1943_p10 }
  0x65   : > { %p1939_p0 = pneg %p1938_p13 }
  0x67   : > { %p1946_p3 = pnand %p1945_p2, %p1939_p0 }
  0x69   : > { %1949 = shalt.err (!%p1946_p3)
}
  0x6a   : > { %1703 = dma.hbm_to_vmem [thread:$0]  (!%p2239_p11), %s2567_s6, 256, %s377_s20, [#allocation14], %s2615_s10, %s2615_s10, %s2614_s3  }
  0x6b   : > { %s1502_s1 = sshll.u32 %s2284_s12, 3  ;;  %s1503_s14 = sshll.u32 %s2094_s21, 7 }
  0x6c   : > { %s412_s29 = scalar_lea.hbm %s2561_s0, %s1503_s14  ;;  %s406_s30 = scalar_lea.vmem [#allocation4], %s1502_s1 }
  0x6d   : > { %s414_s22 = sshll.u32 %s406_s30, 4  ;;  %s403_s5 = scalar_lea.sflag [#allocation5], %s2284_s12  ;;  %s415_s22 = int_to_ptr.vmem [resolvable:$true] %s414_s22 }
  0x6e   : > { %s1963_s9 = scalar_lea.vmem %s415_s22, 128  ;;  %p2617_p9 = pneg %p2286_p1 }
  0x6f   : > { %p1964_p6 = scmp.ne.s32.totalorder %s415_s22, %s1963_s9  ;;  %s2109_s20 = smov [#allocation4]  }
  0x70   : > { %s1968_s3 = sshll.u32 %s2109_s20, 4  ;;  %s1969_s3 = int_to_ptr.vmem [resolvable:$false] %s1968_s3 }
  0x71   : > { %p1966_p12 = pnand %p1964_p6, %p2617_p9  ;;  %s1970_s10 = scalar_lea.vmem %s1969_s3, 256 }
  0x72   : > { %p1971_p11 = scmp.lt.s32.totalorder %s415_s22, %s1969_s3  ;;  %p1972_p0 = scmp.lt.s32.totalorder %s1970_s10, %s1963_s9 }
  0x73   : > { %p1967_p13 = pneg %p1966_p12 }
  0x74   : > { %p1973_p10 = por %p1972_p0, %p1971_p11 }
  0x76   : > { %p1974_p5 = pnand %p1973_p10, %p1967_p13 }
  0x78   : > { %1977 = shalt.err (!%p1974_p5)
}
  0x79   : > { %1707 = dma.hbm_to_vmem [thread:$0]  (!%p2286_p1), %s412_s29, 128, %s415_s22, %s403_s5  }
  0x7a   : > { %s1991_s12 = scalar_lea.vmem %s2353_s16, 256  ;;  %p2618_p3 = pmov %p2617_p9 }
  0x7b   : > { %p1992_p2 = scmp.ne.s32.totalorder %s2353_s16, %s1991_s12  ;;  %s2110_s19 = smov [#allocation9]  }
  0x7c   : > { %s1996_s17 = sshll.u32 %s2110_s19, 4  ;;  %s1997_s17 = int_to_ptr.vmem [resolvable:$false] %s1996_s17 }
  0x7d   : > { %p1994_p6 = pnand %p1992_p2, %p2618_p3  ;;  %s1998_s1 = scalar_lea.vmem %s1997_s17, 512 }
  0x7e   : > { %p1999_p12 = scmp.lt.s32.totalorder %s2353_s16, %s1997_s17  ;;  %p2000_p13 = scmp.lt.s32.totalorder %s1998_s1, %s1991_s12 }
  0x7f   : > { %p1995_p9 = pneg %p1994_p6 }
  0x80   : > { %p2001_p11 = por %p2000_p13, %p1999_p12 }
  0x82   : > { %p2002_p0 = pnand %p2001_p11, %p1995_p9 }
  0x84   : > { %2005 = shalt.err (!%p2002_p0)
}
  0x85   : > { %s2619_s14 = smov 128   ;;  %465 = sbr.rel (%p2230_p8) target bundleno = 1533 (0x5fd), region = 64 }
  0x86   : > { %1713 = dma.hbm_to_vmem [thread:$0]  (!%p2286_p1), %s2317_s24, 256, %s2353_s16, %s2301_s28, %s2619_s14, %s2619_s14, %s2106_s11  }
  0x87   : > { %s2378_s5 = sand.u32 (!%p2230_p8), 1, %s2082_s18  }
  0x88   : > { %s1511_s26 = sshll.u32 (!%p2230_p8), %s2378_s5, 3  ;;  %s468_s15 = scalar_lea.sflag (!%p2230_p8), [#allocation5], %s2378_s5 }
  0x89   : > { %s2384_s13 = scalar_lea.vmem (!%p2230_p8), [#allocation4], %s1511_s26 }
  0x8a   : > { %2057 = dma.done.wait (%p2220_p4), %s468_s15, 128  }
  0x8b   : > { %2059 = vsyncadd (%p2220_p4), %s468_s15, 4294967168  ;;  %s476_s27 = sand.u32 1, %s2211_s23   ;;  %s1512_s28 = sshll.u32 %s2378_s5, 4 }
  0x8c   : > { %s477_s11 = scalar_lea.sflag [#allocation8], %s476_s27  ;;  %s480_s24 = scalar_lea.vmem [#allocation7], %s1512_s28 }
  0x8d   : > { %2061 = dma.done.wait (%p2220_p4), %s477_s11, 512  }
  0x8e   : > { %2063 = vsyncadd (%p2220_p4), %s477_s11, 4294966784  ;;  %s2396_s16 = scalar_lea.vmem [#allocation9], %s1512_s28  ;;  %p2620_p1 = scmp.eq.s32.totalorder %s2211_s23, 0 }
  0x90   : > { %2065 = dma.done.wait (%p2620_p1), [#allocation11], 512   ;;  %p2621_p8 = pmov %p2620_p1 }
  0x91   : > { %p2622_p10 = pmov %p2620_p1 }
  0x92   : > { %2067 = vsyncadd (%p2621_p8), [#allocation11], 4294966784 }
  0x93   : > { %2069 = dma.done.wait (%p2622_p10), [#allocation14], 512   ;;  %p2623_p5 = pmov %p2620_p1 }
  0x94   : > { %v2111_v0 = vmov 0.0   ;;  %vm2112_vm0 = vmmov 0   ;;  %v1792_v1 = vld [vmem:[#allocation12 + $0x8] sm:$0xff]   ;;  %v1793_v2 = vld [vmem:[#allocation12] sm:$0xff]   ;;  %vm588_vm1 = vcmask 261120   ;;  %v1794_v6 = vld [vmem:[#allocation10 + $0x8] sm:$0xff]  }
  0x95   : > { %2071 = vsyncadd (%p2623_p5), [#allocation14], 4294966784  ;;  %1587 = vmatprep.subr.bf16.mxu0 %v2111_v0  ;;  %1591 = vmatprep.mubr.msk.bf16.mxu0 %vm2112_vm0, %v2111_v0  ;;  %v559_v3 = vld [vmem:[%s480_s24] sm:$0xff]  ;;  %v560_v4 = vld [vmem:[%s480_s24 + $0x8] sm:$0xff]  ;;  %vm708_vm2 = vcmask 257024   ;;  %vm800_vm3 = vcmask 64512  }
  0x96   : > { %1595 = vmatprep.subr.bf16.mxu1 %v2111_v0  ;;  %1599 = vmatprep.mubr.msk.bf16.mxu1 %vm2112_vm0, %v2111_v0  ;;  %v561_v5 = vpack.c.bf16 %v560_v4, %v559_v3  ;;  %v1795_v7 = vld [vmem:[#allocation10] sm:$0xff]   ;;  %v721_v8 = vld [vmem:[%s2384_s13] sm:$0xff]  ;;  %v1796_v10 = vld [vmem:[#allocation13 + $0x8] sm:$0xff]   ;;  %s2113_s22 = smov 112   ;;  %s2114_s9 = smov 120   ;;  %vm847_vm4 = vcmask 130048  }
  0x97   : > { %1588 = vmatpush3.bf16.msra.mxu0 %v1792_v1  ;;  %v722_v9 = vpack.c.bf16 %v721_v8, %v721_v8  ;;  %1596 = vmatpush3.bf16.msra.mxu1 %v1796_v10  ;;  %v1797_v11 = vld [vmem:[#allocation13] sm:$0xff]   ;;  %v563_v13 = vld [vmem:[%s2396_s16 + $0x8] sm:$0xff]  ;;  %s2115_s20 = smov 104   ;;  %s2624_s12 = sld [smem:[#allocation33_spill]]  ;;  %vm1248_vm5 = vcmask 195584  }
  0x98   : > { %1589 = vmatprep.subr.bf16.mxu0 %v2111_v0  ;;  %v562_v12 = vld [vmem:[%s2396_s16] sm:$0xff]  ;;  %1597 = vmatprep.subr.bf16.mxu1 %v2111_v0  ;;  %s2116_s19 = smov 8   ;;  %s2117_s17 = smov 16  }
  0x99   : > { %v564_v14 = vpack.c.bf16 %v563_v13, %v562_v12  ;;  %v1519_v15 = vld [vmem:[%s2569_s8] ss:$0 sm:$0xff]  ;;  %s2625_s1 = sld [smem:[#allocation24_spill]]  ;;  %s2118_s14 = smov 24  }
  0x9a   : > { %v1531_v26 = vld [vmem:[%s2568_s7] ss:$0 sm:$0xff]  ;;  %s2627_s28 = sld [smem:[#allocation34_spill]]  ;;  %s553_s24 = scalar_lea.vmem [#allocation16], %s1511_s26 }
  0x9b   : > { %1590 = vmatpush3.bf16.msra.mxu0 %v1793_v2  ;;  %1598 = vmatpush3.bf16.msra.mxu1 %v1797_v11  ;;  %s1333_s16 = sshll.u32 %s553_s24, 4  ;;  %s2628_s29 = sld [smem:[#allocation35_spill]]  ;;  %s2514_s16 = int_to_ptr.vmem [resolvable:$true] %s1333_s16 }
  0x9c   : > { %1603 = vmatprep.subr.bf16.mxu0 %v2111_v0  ;;  %1611 = vmatprep.subr.bf16.mxu1 %v2111_v0  ;;  %s2119_s26 = smov [#allocation16]  }
  0x9d   : > { %v1523_v33 = vld [vmem:[%s2624_s12] ss:$0 sm:$0xff] }
  0x9e   : > { %1592 = vmatmul.mubr.msk.bf16.vlgmr.msra.gmra.mxu0 %vm588_vm1, %v561_v5  ;;  %1600 = vmatmul.mubr.msk.bf16.vlgmr.msra.gmra.mxu1 %vm588_vm1, %v564_v14 }
  0x9f   : > { %1604 = vmatpush3.bf16.msra.mxu0 %v1794_v6  ;;  %1607 = vmatprep.mubr.msk.bf16.mxu0 %vm2112_vm0, %v2111_v0  ;;  %s1550_s11 = sshll.u32 %s2625_s1, 7 }
  0xa0   : > { %1605 = vmatprep.subr.bf16.mxu0 %v2111_v0  ;;  %1613 = vmatprep.mubr.msk.bf16.mxu1 %vm2112_vm0, %v2111_v0 }
  0xa1   : > { %s2512_s30 = scalar_lea.hbm %s2628_s29, %s1550_s11 }
  0xa3   : > { %1606 = vmatpush3.bf16.msra.mxu0 %v1795_v7 }
  0xa4   : > { %1617 = vmatprep.subr.bf16.mxu0 %v2111_v0 }
  0xa6   : > { %1608 = vmatmul.mubr.msk.bf16.vlgmr.msra.gmra.mxu0 %vm588_vm1, %v722_v9 }
  0xa7   : > { %1619 = vmatprep.mubr.msk.bf16.mxu0 %vm2112_vm0, %v2111_v0 }
 0x15e   : > { %v626_v16 = vpop.f32.mrf.mxu0  ;;  %v693_v34 = vpop.f32.mrf.mxu1 }
 0x15f   : > { %v627_v17 = vadd.f32 %v1519_v15, %v626_v16  ;;  %v694_v35 = vadd.f32 %v1523_v33, %v693_v34 }
 0x160   : > { %v1593_v18 = vpop.f32.mrf.mxu0  ;;  %v1601_v36 = vpop.f32.mrf.mxu1 }
 0x161   : > { %v1555_v19 = vpack.c.bf16 %v627_v17, %v627_v17  ;;  %v1557_v37 = vpack.c.bf16 %v694_v35, %v694_v35 }
 0x162   : > { %v629_v20 = vpop.f32.mrf.mxu0  ;;  %v696_v38 = vpop.f32.mrf.mxu1 }
 0x163   : > { %709 = vst.msk [vmem:[#allocation2] sm:$0xf] %vm708_vm2, %v1555_v19  ;;  %v630_v21 = vadd.f32 %v1519_v15, %v629_v20  ;;  %719 = vst.msk [vmem:[#allocation3] sm:$0xf] %vm708_vm2, %v1557_v37  ;;  %v697_v39 = vadd.f32 %v1523_v33, %v696_v38 }
 0x164   : > { %v1594_v22 = vpop.f32.mrf.mxu0  ;;  %v1602_v40 = vpop.f32.mrf.mxu1 }
 0x165   : > { %v1556_v23 = vpack.c.bf16 %v630_v21, %v630_v21  ;;  %v1558_v41 = vpack.c.bf16 %v697_v39, %v697_v39 }
 0x166   : > { %v784_v24 = vpop.f32.mrf.mxu0 }
 0x167   : > { %710 = vst.msk [vmem:[#allocation2 + $0x4] sm:$0xf] %vm708_vm2, %v1556_v23  ;;  %v785_v28 = vadd.f32 %v1531_v26, %v784_v24  ;;  %720 = vst.msk [vmem:[#allocation3 + $0x4] sm:$0xf] %vm708_vm2, %v1558_v41 }
 0x168   : > { %v1609_v25 = vpop.f32.mrf.mxu0 }
 0x169   : > { %v790_v31 = vpack.c.bf16 %v785_v28, %v785_v28 }
 0x16a   : > { %v787_v27 = vpop.f32.mrf.mxu0 }
 0x16c   : > { %v1610_v29 = vpop.f32.mrf.mxu0 }
 0x16e   : > { %v1798_v30 = vld [vmem:[#allocation2] sm:$0xff]   ;;  %v2454_v42 = vld [vmem:[#allocation3] sm:$0xff]  }
 0x16f   : > { %1020 = vrot.lane.b32.xlu1 %v1798_v30, %s2113_s22  ;;  %912 = vrot.lane.b32.xlu0 %v1798_v30, %s2114_s9  ;;  %v805_v32 = vsel %vm800_vm3, %v1798_v30, 0 }
 0x170   : > { %1612 = vmatpush3.bf16.xpose.msra.mxu1 %v805_v32  ;;  %1618 = vmatpush3.bf16.msra.mxu0 %v2454_v42 }
 0x171   : > { %1623 = vmatprep.subr.bf16.mxu1 %v2111_v0  ;;  %1629 = vmatprep.subr.bf16.mxu0 %v2111_v0 }
 0x173   : > { %1018 = vrot.lane.b32.xlu1 %v790_v31, %s2113_s22  ;;  %910 = vrot.lane.b32.xlu0 %v790_v31, %s2114_s9 }
 0x177   : > { %1126 = vrot.lane.b32.xlu1 %v790_v31, %s2115_s20  ;;  %1128 = vrot.lane.b32.xlu0 %v1798_v30, %s2115_s20 }
 0x178   : > { %1614 = vmatmul.mubr.msk.bf16.vlgmr.msra.gmra.mxu1 %vm800_vm3, %v790_v31 }
 0x179   : > { %1625 = vmatprep.mubr.msk.bf16.mxu1 %vm2112_vm0, %v2111_v0 }
 0x1e1   : > { %v913_v43 = vpop.permute.xlu0 %912  ;;  %v1021_v45 = vpop.permute.xlu1 %1020 }
 0x1e2   : > { %v918_v44 = vsel %vm800_vm3, %v913_v43, 0  ;;  %v1026_v47 = vsel %vm800_vm3, %v1021_v45, 0 }
 0x1e3   : > { %1624 = vmatpush3.bf16.xpose.msra.mxu1 %v918_v44 }
 0x1e4   : > { %1635 = vmatprep.subr.bf16.mxu1 %v2111_v0 }
 0x1e5   : > { %v911_v46 = vpop.permute.xlu0 %910  ;;  %v1019_v49 = vpop.permute.xlu1 %1018 }
 0x1e9   : > { %v1129_v48 = vpop.permute.xlu0 %1128  ;;  %v1127_v51 = vpop.permute.xlu1 %1126 }
 0x1ea   : > { %1626 = vmatmul.mubr.msk.bf16.vlgmr.msra.gmra.mxu1 %vm800_vm3, %v911_v46  ;;  %v1134_v50 = vsel %vm800_vm3, %v1129_v48, 0 }
 0x1eb   : > { %1636 = vmatpush3.bf16.xpose.msra.mxu1 %v1026_v47  ;;  %1637 = vmatprep.mubr.msk.bf16.mxu1 %vm2112_vm0, %v2111_v0 }
 0x1ec   : > { %1647 = vmatprep.subr.bf16.mxu1 %v2111_v0 }
 0x1f2   : > { %1638 = vmatmul.mubr.msk.bf16.vlgmr.msra.gmra.mxu1 %vm800_vm3, %v1019_v49 }
 0x1f3   : > { %1648 = vmatpush3.bf16.xpose.msra.mxu1 %v1134_v50  ;;  %1649 = vmatprep.mubr.msk.bf16.mxu1 %vm2112_vm0, %v2111_v0 }
 0x1f4   : > { %1659 = vmatprep.subr.bf16.mxu1 %v2111_v0 }
 0x1fa   : > { %1650 = vmatmul.mubr.msk.bf16.vlgmr.msra.gmra.mxu1 %vm800_vm3, %v1127_v51 }
 0x1fb   : > { %1663 = vmatprep.mubr.msk.bf16.mxu1 %vm2112_vm0, %v2111_v0 }
 0x238   : > { %v841_v52 = vpop.f32.mrf.mxu1 }
 0x239   : > { %v848_v53 = vsel %vm847_vm4, %v841_v52, -inf }
 0x23a   : > { %849 = vmax.xlane.f32.xlu0 %v848_v53  ;;  %v1615_v54 = vpop.f32.mrf.mxu1 }
 0x23c   : > { %v844_v55 = vpop.f32.mrf.mxu1 }
 0x23e   : > { %v1616_v56 = vpop.f32.mrf.mxu1 }
 0x23f   : > { %v1801_v56 = vld [vmem:[#allocation15] sm:$0xff]  }
 0x2aa   : > { %v954_v57 = vpop.f32.mrf.mxu1 }
 0x2ab   : > { %v960_v58 = vsel %vm847_vm4, %v954_v57, -inf }
 0x2ac   : > { %961 = vmax.xlane.f32.xlu1 %v960_v58  ;;  %v1627_v59 = vpop.f32.mrf.mxu1 }
 0x2ae   : > { %v957_v60 = vpop.f32.mrf.mxu1 }
 0x2b0   : > { %v1628_v61 = vpop.f32.mrf.mxu1 }
 0x2b2   : > { %v1062_v62 = vpop.f32.mrf.mxu1 }
 0x2b3   : > { %v1068_v63 = vsel %vm847_vm4, %v1062_v62, -inf }
 0x2b4   : > { %1069 = vmax.xlane.f32.xlu0 %v1068_v63  ;;  %v1639_v1 = vpop.f32.mrf.mxu1 }
 0x2b6   : > { %v1065_v2 = vpop.f32.mrf.mxu1 }
 0x2b8   : > { %v1640_v3 = vpop.f32.mrf.mxu1 }
 0x2ba   : > { %v1170_v4 = vpop.f32.mrf.mxu1 }
 0x2bb   : > { %v1176_v5 = vsel %vm847_vm4, %v1170_v4, -inf }
 0x2bc   : > { %1177 = vmax.xlane.f32.xlu0 %v1176_v5  ;;  %v1651_v6 = vpop.f32.mrf.mxu1 }
 0x2be   : > { %v1173_v7 = vpop.f32.mrf.mxu1 }
 0x2c0   : > { %v1652_v8 = vpop.f32.mrf.mxu1 }
 0x2c3   : > { %v850_v9 = vpop.xlane.xlu0 %849 }
 0x2c4   : > { %v851_v10 = vsub.f32 %v841_v52, %v850_v9  ;;  %v1800_v52 = vld [vmem:[#allocation15 + $0x8] sm:$0xff]   ;;  %v1545_v9 = vld [vmem:[%s2627_s28] ss:$0 sm:$0xff] }
 0x2c5   : > { %1660 = vmatpush3.bf16.msra.mxu1 %v1800_v52 }
 0x2c6   : > { %v852_v11 = vmul.f32 1.442695, %v851_v10  ;;  %1661 = vmatprep.subr.bf16.mxu1 %v2111_v0 }
 0x2c8   : > { %1802 = vpow2.f32 %v852_v11 }
 0x2c9   : > { %1662 = vmatpush3.bf16.msra.mxu1 %v1801_v56 }
 0x2d5   : > { %v1803_v12 = vpop.eup %1802 }
 0x2d6   : > { %v854_v13 = vsel %vm847_vm4, %v1803_v12, 0.0 }
 0x2d7   : > { %855 = vadd.xlane.f32.xlu1 %v854_v13 }
 0x2e8   : > { %972 = vrot.lane.b32.xlu1 %v2454_v42, %s2114_s9  ;;  %s2006_s9 = scalar_lea.vmem %s2514_s16, 128 }
 0x2e9   : > { %p2007_p4 = scmp.ne.s32.totalorder %s2514_s16, %s2006_s9 }
 0x2eb   : > { %p2008_p2 = pnand %p2007_p4, %p2277_p7 }
 0x2ed   : > { %p2009_p3 = pneg %p2008_p2 }
 0x335   : > { %v962_v14 = vpop.xlane.xlu1 %961 }
 0x336   : > { %v963_v15 = vsub.f32 %v954_v57, %v962_v14 }
 0x338   : > { %v964_v16 = vmul.f32 1.442695, %v963_v15 }
 0x33a   : > { %1804 = vpow2.f32 %v964_v16 }
 0x33d   : > { %v1070_v17 = vpop.xlane.xlu0 %1069 }
 0x33e   : > { %v1071_v18 = vsub.f32 %v1062_v62, %v1070_v17 }
 0x340   : > { %v1072_v19 = vmul.f32 1.442695, %v1071_v18 }
 0x342   : > { %1806 = vpow2.f32 %v1072_v19 }
 0x345   : > { %v1178_v20 = vpop.xlane.xlu0 %1177 }
 0x346   : > { %v1179_v21 = vsub.f32 %v1170_v4, %v1178_v20 }
 0x347   : > { %v1805_v22 = vpop.eup %1804 }
 0x348   : > { %v1180_v23 = vmul.f32 1.442695, %v1179_v21  ;;  %v966_v24 = vsel %vm847_vm4, %v1805_v22, 0.0 }
 0x349   : > { %967 = vadd.xlane.f32.xlu0 %v966_v24 }
 0x34a   : > { %1808 = vpow2.f32 %v1180_v23 }
 0x34f   : > { %v1807_v25 = vpop.eup %1806 }
 0x350   : > { %v1074_v26 = vsel %vm847_vm4, %v1807_v25, 0.0 }
 0x351   : > { %1075 = vadd.xlane.f32.xlu1 %v1074_v26 }
 0x357   : > { %v1809_v27 = vpop.eup %1808 }
 0x358   : > { %v1182_v28 = vsel %vm847_vm4, %v1809_v27, 0.0 }
 0x359   : > { %1183 = vadd.xlane.f32.xlu0 %v1182_v28 }
 0x360   : > { %v856_v29 = vpop.xlane.xlu1 %855 }
 0x361   : > { %1810 = vrcp.f32 %v856_v29 }
 0x362   : > { %1188 = vrot.lane.b32.xlu1 %v2454_v42, %s2115_s20  ;;  %s2010_s20 = sshll.u32 %s2119_s26, 4  ;;  %s2011_s20 = int_to_ptr.vmem [resolvable:$false] %s2010_s20 }
 0x363   : > { %s2012_s3 = scalar_lea.vmem %s2011_s20, 256  ;;  %p2013_p6 = scmp.lt.s32.totalorder %s2514_s16, %s2011_s20 }
 0x364   : > { %v973_v33 = vpop.permute.xlu1 %972  ;;  %p2014_p9 = scmp.lt.s32.totalorder %s2012_s3, %s2006_s9 }
 0x366   : > { %p2015_p12 = por %p2014_p9, %p2013_p6 }
 0x368   : > { %p2016_p13 = pnand %p2015_p12, %p2009_p3 }
 0x36e   : > { %v1811_v30 = vpop.eup %1810 }
 0x36f   : > { %1080 = vrot.lane.b32.xlu0 %v2454_v42, %s2113_s22  ;;  %v858_v31 = vmul.f32 %v1811_v30, %v1803_v12  ;;  %s1319_s22 = scalar_lea.sflag [#allocation6], %s2378_s5 }
 0x371   : > { %v859_v32 = vpack.c.bf16 %v858_v31, %v858_v31 }
 0x373   : > { %1620 = vmatmul.mubr.msk.bf16.vlgmr.msra.gmra.mxu0 %vm847_vm4, %v859_v32 }
 0x374   : > { %1630 = vmatpush3.bf16.msra.mxu0 %v973_v33  ;;  %1631 = vmatprep.mubr.msk.bf16.mxu0 %vm2112_vm0, %v2111_v0 }
 0x375   : > { %1641 = vmatprep.subr.bf16.mxu0 %v2111_v0 }
 0x3d2   : > { %v968_v34 = vpop.xlane.xlu0 %967 }
 0x3d3   : > { %1812 = vrcp.f32 %v968_v34 }
 0x3da   : > { %v1076_v35 = vpop.xlane.xlu1 %1075 }
 0x3db   : > { %1814 = vrcp.f32 %v1076_v35 }
 0x3de   : > { %v1189_v44 = vpop.permute.xlu1 %1188 }
 0x3e0   : > { %v1813_v36 = vpop.eup %1812 }
 0x3e1   : > { %v970_v37 = vmul.f32 %v1813_v36, %v1805_v22 }
 0x3e2   : > { %v1184_v38 = vpop.xlane.xlu0 %1183 }
 0x3e3   : > { %1816 = vrcp.f32 %v1184_v38  ;;  %v971_v39 = vpack.c.bf16 %v970_v37, %v970_v37 }
 0x3e5   : > { %1632 = vmatmul.mubr.msk.bf16.vlgmr.msra.gmra.mxu0 %vm847_vm4, %v971_v39 }
 0x3e6   : > { %v1081_v40 = vpop.permute.xlu0 %1080  ;;  %1643 = vmatprep.mubr.msk.bf16.mxu0 %vm2112_vm0, %v2111_v0 }
 0x3e7   : > { %1642 = vmatpush3.bf16.msra.mxu0 %v1081_v40 }
 0x3e8   : > { %v1815_v41 = vpop.eup %1814  ;;  %1653 = vmatprep.subr.bf16.mxu0 %v2111_v0 }
 0x3e9   : > { %v1078_v42 = vmul.f32 %v1815_v41, %v1807_v25 }
 0x3eb   : > { %v1079_v43 = vpack.c.bf16 %v1078_v42, %v1078_v42 }
 0x3ed   : > { %1644 = vmatmul.mubr.msk.bf16.vlgmr.msra.gmra.mxu0 %vm847_vm4, %v1079_v43 }
 0x3ee   : > { %1654 = vmatpush3.bf16.msra.mxu0 %v1189_v44  ;;  %1655 = vmatprep.mubr.msk.bf16.mxu0 %vm2112_vm0, %v2111_v0 }
 0x3f0   : > { %v1817_v45 = vpop.eup %1816 }
 0x3f1   : > { %v1186_v46 = vmul.f32 %v1817_v45, %v1809_v27 }
 0x3f3   : > { %v1187_v47 = vpack.c.bf16 %v1186_v46, %v1186_v46 }
 0x3f5   : > { %1656 = vmatmul.mubr.msk.bf16.vlgmr.msra.gmra.mxu0 %vm847_vm4, %v1187_v47 }
 0x433   : > { %v903_v48 = vpop.f32.mrf.mxu0 }
 0x435   : > { %v1621_v49 = vpop.f32.mrf.mxu0 }
 0x437   : > { %v906_v50 = vpop.f32.mrf.mxu0 }
 0x439   : > { %v1622_v51 = vpop.f32.mrf.mxu0 }
 0x4a5   : > { %v1012_v53 = vpop.f32.mrf.mxu0 }
 0x4a6   : > { %1235 = vrot.lane.b32.xlu1 %v1012_v53, %s2116_s19 }
 0x4a7   : > { %v1633_v54 = vpop.f32.mrf.mxu0 }
 0x4a9   : > { %v1015_v55 = vpop.f32.mrf.mxu0 }
 0x4ab   : > { %v1634_v57 = vpop.f32.mrf.mxu0 }
 0x4ad   : > { %v1120_v58 = vpop.f32.mrf.mxu0 }
 0x4ae   : > { %1239 = vrot.lane.b32.xlu0 %v1120_v58, %s2117_s17 }
 0x4af   : > { %v1645_v59 = vpop.f32.mrf.mxu0 }
 0x4b1   : > { %v1123_v60 = vpop.f32.mrf.mxu0 }
 0x4b3   : > { %v1646_v61 = vpop.f32.mrf.mxu0 }
 0x4b5   : > { %v1228_v62 = vpop.f32.mrf.mxu0 }
 0x4b6   : > { %1243 = vrot.lane.b32.xlu1 %v1228_v62, %s2118_s14 }
 0x4b7   : > { %v1657_v0 = vpop.f32.mrf.mxu0 }
 0x4b9   : > { %v1231_v63 = vpop.f32.mrf.mxu0 }
 0x4bb   : > { %v1658_v1 = vpop.f32.mrf.mxu0 }
 0x518   : > { %v1236_v2 = vpop.permute.xlu1 %1235 }
 0x519   : > { %v1246_v4 = vsel %vm800_vm3, %v903_v48, %v1236_v2 }
 0x520   : > { %v1240_v3 = vpop.permute.xlu0 %1239 }
 0x521   : > { %v1247_v5 = vsel %vm847_vm4, %v1246_v4, %v1240_v3 }
 0x528   : > { %v1244_v6 = vpop.permute.xlu1 %1243 }
 0x529   : > { %v1249_v7 = vsel %vm1248_vm5, %v1247_v5, %v1244_v6 }
 0x52a   : > { %v1250_v8 = vpack.c.bf16 %v1249_v7, %v1249_v7 }
 0x52c   : > { %1664 = vmatmul.mubr.msk.bf16.vlgmr.msra.gmra.mxu1 %vm588_vm1, %v1250_v8 }
 0x5ec   : > { %v1311_v10 = vpop.f32.mrf.mxu1 }
 0x5ed   : > { %v1312_v11 = vadd.f32 %v1545_v9, %v1311_v10 }
 0x5ee   : > { %v1665_v12 = vpop.f32.mrf.mxu1 }
 0x5ef   : > { %1317 = vst.msk [vmem:[%s553_s24] sm:$0xff] %vm588_vm1, %v1312_v11 }
 0x5f0   : > { %v1314_v13 = vpop.f32.mrf.mxu1 }
 0x5f1   : > { %2019 = shalt.err (!%p2016_p13)
}
 0x5f2   : > { %s2020_s10 = scalar_lea.hbm %s2512_s30, 128  ;;  %s2024_s19 = scalar_lea.hbm %s2628_s29, 256 }
 0x5f3   : > { %p2021_p11 = scmp.ne.s32.totalorder %s2512_s30, %s2020_s10  ;;  %p2025_p8 = scmp.lt.s32.totalorder %s2512_s30, %s2628_s29 }
 0x5f4   : > { %p2026_p10 = scmp.lt.s32.totalorder %s2024_s19, %s2020_s10 }
 0x5f5   : > { %p2022_p0 = pnand %p2021_p11, %p2277_p7 }
 0x5f6   : > { %p2027_p5 = por %p2026_p10, %p2025_p8 }
 0x5f7   : > { %p2023_p1 = pneg %p2022_p0 }
 0x5f9   : > { %p2028_p4 = pnand %p2027_p5, %p2023_p1 }
 0x5fb   : > { %2031 = shalt.err (!%p2028_p4)
}
 0x5fc   : > { %1689 = dma.vmem_to_hbm [thread:$0]  (%p2277_p7), %s2514_s16, 128, %s2512_s30, %s1319_s22   ;;  %v1666_v14 = vpop.f32.mrf.mxu1 }
 0x5fd PF: > { %s2629_s14 = sld [smem:[#allocation22_spill]] }
 0x5fe   : > { %s2630_s13 = sld [smem:[#allocation26_spill]] }
 0x5ff   : > { %s2631_s27 = sld [smem:[#allocation25_spill]] }
 0x603   : > { %s1345_s28 = sand.u32 1, %s2629_s14  }
 0x604   : > { %p2632_p2 = scmp.ne.s32.totalorder %s2630_s13, 0  ;;  %s1346_s11 = scalar_lea.sflag [#allocation6], %s1345_s28 }
 0x605   : > { %p2633_p3 = scmp.ge.s32.totalorder %s2631_s27, 2 }
 0x607   : > { %p1715_p6 = pnand %p2633_p3, %p2632_p2 }
 0x609   : > { %p1716_p9 = pneg %p1715_p6 }
 0x60b   : > { %2073 = dma.done.wait (%p1716_p9), %s1346_s11, 128  }
 0x60c   : > { %2075 = vsyncadd (%p1716_p9), %s1346_s11, 4294967168  ;;  %s32_s22 = sadd.s32 1, %s2631_s27   ;;  %s2634_s15 = sld [smem:[#allocation23_spill]] }
 0x60d   : > { %p29_p12 = scmp.ge.s32.totalorder %s32_s22, 4   ;;  %s2635_s19 = sld [smem:[#allocation29_spill]] }
 0x60e   : > { %s2636_s24 = sld [smem:[#allocation27_spill]]  ;;  %s2637_s17 = smov %s2082_s18 }
 0x60f   : > { %s2639_s20 = smov %s2094_s21 }
 0x610   :  { %31 = sbr.rel (!%p29_p12) target bundleno = 17 (0x11), region = 153 }
 0x612   : > { %s2638_s18 = smov %s2634_s15 }
 0x614   : > { %s2640_s21 = smov %s2636_s24 }
 0x615   :  { %1351 = vsyncpa [#allocation5], 1 }
 0x616   :  { %1353 = vsyncpa [#allocation5 + $0x1], 1 }
 0x617   :  { %1354 = vsyncpa [#allocation8], 1 }
 0x618   :  { %1356 = vsyncpa [#allocation8 + $0x1], 1 }
 0x619   :  { %1357 = vsyncpa [#allocation11], 1 }
 0x61a   :  { %1358 = vsyncpa [#allocation14], 1 }
 0x61b   :  { %1359 = vsyncpa [#allocation6], 1 }
 0x61c   :  { %1361 = vsyncpa [#allocation6 + $0x1], 1 }

</bundles_post_ra>
